<compile_context>
chip_gen: v7x
topology: tpu7x:2x2x1
jax: 0.10.0
libtpu: 0.0.40
codegen_flags: <defaults>
</compile_context>

<pallas_src>
import functools

import jax
import jax.numpy as jnp
from jax.experimental import pallas as pl
from jax.experimental.pallas import tpu as pltpu


def _round_up(x, m):
    return ((x + m - 1) // m) * m


def _pick_tile(n_p, cap):
    """Largest multiple of 128 that divides n_p and is <= cap (>= 128)."""
    best = 128
    t = 128
    while t <= min(cap, n_p):
        if n_p % t == 0:
            best = t
        t += 128
    return best


# ---------------------------------------------------------------------------
# Fused kernel: one (i, k) grid step of
#     out[i] = sum_k adj[i, k] @ (x[k] @ W^T + b)
# ---------------------------------------------------------------------------
def _gcn_kernel(adj_ref, x_ref, wt_ref, b_ref, o_ref, acc_ref, *, use_relu):
    k = pl.program_id(1)

    @pl.when(k == 0)
    def _():
        acc_ref[...] = jnp.zeros_like(acc_ref)

    # Fused Linear: support tile for contraction block k, never leaves VMEM.
    sup = jnp.dot(x_ref[...], wt_ref[...], preferred_element_type=jnp.float32)
    sup = sup + b_ref[...]                      # bias add stays in f32 (VPU)

    acc_ref[...] += jnp.dot(adj_ref[...], sup.astype(jnp.bfloat16),
                            preferred_element_type=jnp.float32)

    @pl.when(k == pl.num_programs(1) - 1)
    def _():
        out = acc_ref[...]
        if use_relu:                            # fused epilogue, once per output tile
            out = jnp.maximum(out, 0.0)
        o_ref[...] = out.astype(o_ref.dtype)    # bf16 writeback


def prepare_adj(adj):
    """Pad adj to a multiple of 128 and cast to bf16.

    Call ONCE per graph: the adjacency is reused by every GCN layer and every
    training step, so this full N^2 HBM read+write pass must not be repeated
    per layer call (it would roughly double effective adj traffic).
    """
    n = adj.shape[0]
    n_p = _round_up(n, 128)
    if n_p == n and adj.dtype == jnp.bfloat16:
        return adj
    return jnp.zeros((n_p, n_p), jnp.bfloat16).at[:n, :n].set(
        adj.astype(jnp.bfloat16))


def graph_convolution(x, w, b, adj_p, *, activation=None):
    """GCN layer forward.

    x:     [N, F_in] node features.
    w:     [F_out, F_in] weight in nn.Linear layout.
    b:     [F_out] bias.
    adj_p: [N_p, N_p] bf16 adjacency from prepare_adj() (N_p = roundup(N, 128)).
    """
    n, f_in = x.shape
    f_out = w.shape[0]
    n_p = adj_p.shape[0]
    assert adj_p.shape == (n_p, n_p) and n_p % 128 == 0 and n_p >= n

    f_in_p = _round_up(f_in, 128)
    f_out_p = _round_up(f_out, 128)

    # Decoupled tiles; reduction axis (k) is the last grid axis.
    t_i = _pick_tile(n_p, 512)
    t_k = _pick_tile(n_p, 2048)

    # Zero padding is exact: padded adj columns are 0, so the bias that leaks
    # into padded support rows never reaches a valid output row; padded output
    # rows/cols are sliced off below.
    if (n, f_in) == (n_p, f_in_p) and x.dtype == jnp.bfloat16:
        x_p = x
    else:
        x_p = jnp.zeros((n_p, f_in_p), jnp.bfloat16).at[:n, :f_in].set(
            x.astype(jnp.bfloat16))
    # Weight/bias prep is tiny (F_in x F_out); in a real model pre-cast once.
    w_t = jnp.zeros((f_in_p, f_out_p), jnp.bfloat16).at[:f_in, :f_out].set(
        jnp.transpose(w).astype(jnp.bfloat16))
    b_p = jnp.zeros((1, f_out_p), jnp.float32).at[0, :f_out].set(
        b.astype(jnp.float32))

    # Explicit VMEM budget: double-buffered inputs/outputs + f32 accumulator.
    # At the largest tiles (t_i=512, t_k=2048, 128-wide features) this is
    # ~6 MiB, far under v7x's 64 MiB physical / 32 MiB scoped default.
    work_set = (2 * t_i * t_k * 2              # adj tiles (bf16)
                + 2 * t_k * f_in_p * 2         # x tiles (bf16)
                + 2 * f_in_p * f_out_p * 2     # W^T (resident, bf16)
                + 2 * f_out_p * 4              # bias (resident, f32)
                + 2 * t_i * f_out_p * 2        # out tiles (bf16)
                + t_i * f_out_p * 4)           # acc scratch (f32)
    vmem_limit = int(min(40 << 20, max(16 << 20, 2 * work_set)))

    use_relu = activation in ("relu", jax.nn.relu)
    kernel = functools.partial(_gcn_kernel, use_relu=use_relu)

    out_p = pl.pallas_call(
        kernel,
        out_shape=jax.ShapeDtypeStruct((n_p, f_out_p), jnp.bfloat16),
        grid=(n_p // t_i, n_p // t_k),
        in_specs=[
            pl.BlockSpec((t_i, t_k), lambda i, k: (i, k)),         # adj tile
            pl.BlockSpec((t_k, f_in_p), lambda i, k: (k, 0)),      # x rows for block k
            pl.BlockSpec((f_in_p, f_out_p), lambda i, k: (0, 0)),  # W^T (resident)
            pl.BlockSpec((1, f_out_p), lambda i, k: (0, 0)),       # bias (resident)
        ],
        out_specs=pl.BlockSpec((t_i, f_out_p), lambda i, k: (i, 0)),
        scratch_shapes=[pltpu.VMEM((t_i, f_out_p), jnp.float32)],
        compiler_params=pltpu.CompilerParams(
            dimension_semantics=("parallel", "arbitrary"),
            vmem_limit_bytes=vmem_limit),
    )(adj_p, x_p, w_t, b_p)

    out = out_p[:n, :f_out]
    if activation is not None and not use_relu:
        out = activation(out)   # unfused fallback for arbitrary callables
    # TODO(synk): F.dropout not implemented (module default dropout=False);
    # would use pltpu.prng_seed + pltpu.prng_random_bits if enabled.
    return out


if __name__ == "__main__":
    # Small GCN: N=64 nodes, in_features=32, out_features=128.
    N, F_IN, F_OUT = 64, 32, 128
    key = jax.random.PRNGKey(0)
    kx, kw, kb, ka = jax.random.split(key, 4)

    x = jax.random.normal(kx, (N, F_IN), dtype=jnp.float32)
    # Deterministic nn.Linear-style init: U(-1/sqrt(in), 1/sqrt(in))
    bound = 1.0 / (F_IN ** 0.5)
    w = jax.random.uniform(kw, (F_OUT, F_IN), jnp.float32, -bound, bound)
    b = jax.random.uniform(kb, (F_OUT,), jnp.float32, -bound, bound)
    # Symmetric row-normalized adjacency (dense stand-in for the sparse adj).
    a_raw = (jax.random.uniform(ka, (N, N)) > 0.8).astype(jnp.float32)
    adj = a_raw + a_raw.T + jnp.eye(N, dtype=jnp.float32)
    adj = adj / jnp.sum(adj, axis=1, keepdims=True)

    adj_prepped = prepare_adj(adj)          # done once per graph, reused by all layers
    out = graph_convolution(x, w, b, adj_prepped, activation=None)
    out = jax.block_until_ready(out)

    # Reference check against plain JAX f32 (same math as the PyTorch module).
    # bf16 matmul operands + bf16 output -> loosened tolerance vs f32 reference.
    ref = adj @ (x @ w.T + b)
    assert out.shape == (N, F_OUT)
    assert jnp.allclose(out.astype(jnp.float32), ref, atol=5e-2, rtol=5e-2), \
        "mismatch vs reference"

    print("KERNEL_OK")
</pallas_src>

<mosaic_0001>
module attributes {stable_mosaic.version = 11 : i64} {
  func.func @_gcn_kernel(%arg0: i32, %arg1: i32, %arg2: memref<128x128xbf16, #tpu.memory_space<vmem>>, %arg3: memref<128x128xbf16, #tpu.memory_space<vmem>>, %arg4: memref<128x128xbf16, #tpu.memory_space<vmem>>, %arg5: memref<1x128xf32, #tpu.memory_space<vmem>>, %arg6: memref<128x128xbf16, #tpu.memory_space<vmem>>, %arg7: memref<128x128xf32, #tpu.memory_space<vmem>>) attributes {dimension_semantics = [#tpu.dimension_semantics<parallel>, #tpu.dimension_semantics<arbitrary>], iteration_bounds = array<i64: 1, 1>, scalar_prefetch = 0 : i64, scratch_operands = 1 : i64, tpu.core_type = #tpu.core_type<tc>, window_params = [{transform_indices = @transform_0, window_bounds = array<i64: 128, 128>}, {transform_indices = @transform_1, window_bounds = array<i64: 128, 128>}, {pipeline_mode = #tpu.pipeline_mode<synchronous>, transform_indices = @transform_2, window_bounds = array<i64: 128, 128>}, {pipeline_mode = #tpu.pipeline_mode<synchronous>, transform_indices = @transform_3, window_bounds = array<i64: 1, 128>}, {transform_indices = @transform_4, window_bounds = array<i64: 128, 128>}]} {
    %c0_i32 = arith.constant 0 : i32
    %0 = arith.cmpi eq, %arg1, %c0_i32 : i32
    %1 = arith.extui %0 : i1 to i32
    %c0_i32_0 = arith.constant 0 : i32
    %2 = arith.cmpi ne, %1, %c0_i32_0 : i32
    scf.if %2 {
      %cst_15 = arith.constant 0.000000e+00 : f32
      %18 = vector.broadcast %cst_15 : f32 to vector<128x128xf32>
      %c0_16 = arith.constant 0 : index
      %c0_17 = arith.constant 0 : index
      %19 = vector.load %arg7[%c0_16, %c0_17] : memref<128x128xf32, #tpu.memory_space<vmem>>, vector<128x128xf32>
      tpu.vector_store %arg7[%c0_16, %c0_17], %18 {strides = array<i32>} : memref<128x128xf32, #tpu.memory_space<vmem>>, vector<128x128xf32>,
    } else {
    }
    %c0 = arith.constant 0 : index
    %c0_1 = arith.constant 0 : index
    %3 = vector.load %arg3[%c0, %c0_1] : memref<128x128xbf16, #tpu.memory_space<vmem>>, vector<128x128xbf16>
    %c0_2 = arith.constant 0 : index
    %c0_3 = arith.constant 0 : index
    %4 = vector.load %arg4[%c0_2, %c0_3] : memref<128x128xbf16, #tpu.memory_space<vmem>>, vector<128x128xbf16>
    %cst = arith.constant dense<0.000000e+00> : vector<128x128xf32>
    %5 = tpu.matmul %3, %4, %cst {dimension_numbers = #tpu.dot_dimension_numbers<[1], [0], [0], [1], [0, 0, 1, 1], [], []>} : vector<128x128xbf16>, vector<128x128xbf16>, vector<128x128xf32> -> vector<128x128xf32>
    %c0_4 = arith.constant 0 : index
    %c0_5 = arith.constant 0 : index
    %6 = vector.load %arg5[%c0_4, %c0_5] : memref<1x128xf32, #tpu.memory_space<vmem>>, vector<1x128xf32>
    %7 = vector.broadcast %6 : vector<1x128xf32> to vector<128x128xf32>
    %8 = arith.addf %5, %7 : vector<128x128xf32>
    %c0_6 = arith.constant 0 : index
    %c0_7 = arith.constant 0 : index
    %9 = vector.load %arg7[%c0_6, %c0_7] : memref<128x128xf32, #tpu.memory_space<vmem>>, vector<128x128xf32>
    %c0_8 = arith.constant 0 : index
    %c0_9 = arith.constant 0 : index
    %10 = vector.load %arg2[%c0_8, %c0_9] : memref<128x128xbf16, #tpu.memory_space<vmem>>, vector<128x128xbf16>
    %11 = arith.truncf %8 : vector<128x128xf32> to vector<128x128xbf16>
    %cst_10 = arith.constant dense<0.000000e+00> : vector<128x128xf32>
    %12 = tpu.matmul %10, %11, %cst_10 {dimension_numbers = #tpu.dot_dimension_numbers<[1], [0], [0], [1], [0, 0, 1, 1], [], []>} : vector<128x128xbf16>, vector<128x128xbf16>, vector<128x128xf32> -> vector<128x128xf32>
    %13 = arith.addf %9, %12 : vector<128x128xf32>
    %c0_11 = arith.constant 0 : index
    %c0_12 = arith.constant 0 : index
    %14 = vector.load %arg7[%c0_11, %c0_12] : memref<128x128xf32, #tpu.memory_space<vmem>>, vector<128x128xf32>
    tpu.vector_store %arg7[%c0_11, %c0_12], %13 {strides = array<i32>} : memref<128x128xf32, #tpu.memory_space<vmem>>, vector<128x128xf32>,
    %c0_i32_13 = arith.constant 0 : i32
    %15 = arith.cmpi eq, %arg1, %c0_i32_13 : i32
    %16 = arith.extui %15 : i1 to i32
    %c0_i32_14 = arith.constant 0 : i32
    %17 = arith.cmpi ne, %16, %c0_i32_14 : i32
    scf.if %17 {
      %c0_15 = arith.constant 0 : index
      %c0_16 = arith.constant 0 : index
      %18 = vector.load %arg7[%c0_15, %c0_16] : memref<128x128xf32, #tpu.memory_space<vmem>>, vector<128x128xf32>
      %19 = arith.truncf %18 : vector<128x128xf32> to vector<128x128xbf16>
      %c0_17 = arith.constant 0 : index
      %c0_18 = arith.constant 0 : index
      %20 = vector.load %arg6[%c0_17, %c0_18] : memref<128x128xbf16, #tpu.memory_space<vmem>>, vector<128x128xbf16>
      tpu.vector_store %arg6[%c0_17, %c0_18], %19 {strides = array<i32>} : memref<128x128xbf16, #tpu.memory_space<vmem>>, vector<128x128xbf16>,
    } else {
    }
    return
  }
  func.func @transform_0(%arg0: i32, %arg1: i32) -> (i32, i32) {
    %c0_i32 = arith.constant 0 : i32
    return %arg0, %arg1 : i32, i32
  }
  func.func @transform_1(%arg0: i32, %arg1: i32) -> (i32, i32) {
    %c0_i32 = arith.constant 0 : i32
    %c0_i32_0 = arith.constant 0 : i32
    return %arg1, %c0_i32 : i32, i32
  }
  func.func @transform_2(%arg0: i32, %arg1: i32) -> (i32, i32) {
    %c0_i32 = arith.constant 0 : i32
    %c0_i32_0 = arith.constant 0 : i32
    %c0_i32_1 = arith.constant 0 : i32
    return %c0_i32, %c0_i32_0 : i32, i32
  }
  func.func @transform_3(%arg0: i32, %arg1: i32) -> (i32, i32) {
    %c0_i32 = arith.constant 0 : i32
    %c0_i32_0 = arith.constant 0 : i32
    %c0_i32_1 = arith.constant 0 : i32
    return %c0_i32, %c0_i32_0 : i32, i32
  }
  func.func @transform_4(%arg0: i32, %arg1: i32) -> (i32, i32) {
    %c0_i32 = arith.constant 0 : i32
    %c0_i32_0 = arith.constant 0 : i32
    return %arg0, %c0_i32 : i32, i32
  }
}

</mosaic_0001>

<bundles_post_ra>
// kernel: tpu_custom_call.1
= control target key start
LH: loop header
LB: loop body
LE: loop exit
PB: predicated region body
PF: predicated region fallthrough
CT: control target
= control target key end

     0   :  { %9 = vsyncpa [#allocation4], 0  ;;  %s1071_s0 = inlined_call_operand.hbm [shape: bf16[128,128], index: 0, kind: input, shape index: {}]   ;;  %s1072_s1 = inlined_call_operand.hbm [shape: bf16[128,128], index: 1, kind: input, shape index: {}]   ;;  %s1073_s2 = inlined_call_operand.hbm [shape: bf16[128,128], index: 2, kind: input, shape index: {}]   ;;  %s1074_s3 = inlined_call_operand.vmem [shape: f32[1,128], index: 3, kind: input, shape index: {}]   ;;  %s1075_s4 = inlined_call_operand.hbm [shape: bf16[128,128], index: 4, kind: output, shape index: {}]  }
   0x1   :  { %10 = vsyncpa [#allocation7], 0 }
   0x2   :  { %11 = vsyncpa [#allocation5], 0  ;;  %s970_s15 = smov [#allocation6]   ;;  %s971_s17 = smov [#allocation3]  }
   0x3   :  { %s29_s16 = sshll.u32 %s970_s15, 4  ;;  %s17_s18 = sshll.u32 %s971_s17, 4  ;;  %s30_s16 = int_to_ptr.vmem [resolvable:$true] %s29_s16  ;;  %s1001_s18 = int_to_ptr.vmem [resolvable:$true] %s17_s18 }
   0x4   :  { %s876_s21 = scalar_lea.hbm %s1072_s1, 1024 }
   0x5   :  { %p877_p0 = scmp.ne.s32.totalorder %s1072_s1, %s876_s21  ;;  %p880_p1 = scmp.lt.u32.totalorder %s876_s21, %s1072_s1 }
   0x7   :  { %p882_p2 = pnand %p880_p1, %p877_p0 }
   0x9   :  { %885 = shalt.err (!%p882_p2)
}
   0xa   :  { %s886_s26 = scalar_lea.vmem %s30_s16, 1024  ;;  %p891_p4 = scmp.lt.s32.totalorder %s30_s16, %s30_s16 }
   0xb   :  { %p887_p3 = scmp.ne.s32.totalorder %s30_s16, %s886_s26  ;;  %p892_p5 = scmp.lt.s32.totalorder %s886_s26, %s886_s26 }
   0xd   :  { %p893_p6 = por %p892_p5, %p891_p4 }
   0xf   :  { %p894_p7 = pnand %p893_p6, %p887_p3 }
  0x11   :  { %897 = shalt.err (!%p894_p7)
}
  0x12   :  { %s972_s27 = smov 64   ;;  %s973_s28 = smov 4  }
  0x13   :  { %35 = dma.hbm_to_vmem [thread:$0]  %s1072_s1, 1024, %s30_s16, [#allocation7], %s972_s27, %s972_s27, %s973_s28  }
  0x14   :  { %s898_s7 = scalar_lea.hbm %s1071_s0, 1024 }
  0x15   :  { %p899_p8 = scmp.ne.s32.totalorder %s1071_s0, %s898_s7  ;;  %p902_p9 = scmp.lt.u32.totalorder %s898_s7, %s1071_s0 }
  0x17   :  { %p904_p10 = pnand %p902_p9, %p899_p8 }
  0x19   :  { %907 = shalt.err (!%p904_p10)
}
  0x1a   :  { %s908_s12 = scalar_lea.vmem %s1001_s18, 1024  ;;  %p913_p12 = scmp.lt.s32.totalorder %s1001_s18, %s1001_s18 }
  0x1b   :  { %p909_p11 = scmp.ne.s32.totalorder %s1001_s18, %s908_s12  ;;  %p914_p13 = scmp.lt.s32.totalorder %s908_s12, %s908_s12 }
  0x1d   :  { %p915_p0 = por %p914_p13, %p913_p12 }
  0x1f   :  { %p916_p1 = pnand %p915_p0, %p909_p11 }
  0x21   :  { %919 = shalt.err (!%p916_p1)
}
  0x22   :  { %23 = dma.hbm_to_vmem [thread:$0]  %s1071_s0, 1024, %s1001_s18, [#allocation4], %s972_s27, %s972_s27, %s973_s28  }
  0x23   :  { %s974_s14 = smov [#allocation8]   ;;  %s920_s19 = scalar_lea.hbm %s1073_s2, 1024 }
  0x24   :  { %s41_s15 = sshll.u32 %s974_s14, 4  ;;  %p921_p2 = scmp.ne.s32.totalorder %s1073_s2, %s920_s19  ;;  %s42_s15 = int_to_ptr.vmem [resolvable:$true] %s41_s15 }
  0x25   :  { %p924_p3 = scmp.lt.u32.totalorder %s920_s19, %s1073_s2 }
  0x27   :  { %p926_p4 = pnand %p924_p3, %p921_p2 }
  0x29   :  { %929 = shalt.err (!%p926_p4)
}
  0x2a   :  { %s930_s24 = scalar_lea.vmem %s42_s15, 1024  ;;  %p935_p6 = scmp.lt.s32.totalorder %s42_s15, %s42_s15 }
  0x2b   :  { %p931_p5 = scmp.ne.s32.totalorder %s42_s15, %s930_s24  ;;  %p936_p7 = scmp.lt.s32.totalorder %s930_s24, %s930_s24 }
  0x2d   :  { %p937_p8 = por %p936_p7, %p935_p6 }
  0x2f   :  { %p938_p9 = pnand %p937_p8, %p931_p5 }
  0x31   :  { %941 = shalt.err (!%p938_p9)
}
  0x32   :  { %47 = dma.hbm_to_vmem [thread:$0]  %s1073_s2, 1024, %s42_s15, [#allocation7], %s972_s27, %s972_s27, %s973_s28  }
  0x33   :  { %964 = dma.done.wait [#allocation4], 1024  }
  0x34   :  { %965 = vsyncadd [#allocation4], 4294966272 }
  0x35   :  { %966 = dma.done.wait [#allocation7], 2048  }
  0x36   :  { %967 = vsyncadd [#allocation7], 4294965248  ;;  %v852_v0 = vld [vmem:[#allocation8] sm:$0xff]   ;;  %v853_v1 = vld [vmem:[#allocation8 + $0x8] sm:$0xff]  }
  0x37   :  { %782 = vmatprep.subr.bf16.mxu0 %v852_v0  ;;  %v854_v2 = vld [vmem:[#allocation8 + $0x10] sm:$0xff]   ;;  %v855_v3 = vld [vmem:[#allocation8 + $0x18] sm:$0xff]   ;;  %v860_v4 = vld [vmem:[#allocation6] sm:$0xff]  }
  0x38   :  { %783 = vmatpush3.bf16.msra.mxu0 %v852_v0  ;;  %798 = vmatprep.mubr.bf16.mxu0 %v860_v4  ;;  %v856_v5 = vld [vmem:[#allocation8 + $0x20] sm:$0xff]   ;;  %v857_v6 = vld [vmem:[#allocation8 + $0x28] sm:$0xff]   ;;  %v858_v7 = vld [vmem:[#allocation8 + $0x30] sm:$0xff]  }
  0x39   :  { %784 = vmatprep.subr.bf16.mxu0 %v853_v1  ;;  %v859_v8 = vld [vmem:[#allocation8 + $0x38] sm:$0xff]   ;;  %v861_v9 = vld [vmem:[#allocation6 + $0x8] sm:$0xff]   ;;  %v862_v10 = vld [vmem:[#allocation6 + $0x10] sm:$0xff]  }
  0x3a   :  { %v863_v11 = vld [vmem:[#allocation6 + $0x18] sm:$0xff]   ;;  %v864_v12 = vld [vmem:[#allocation6 + $0x20] sm:$0xff]   ;;  %v865_v13 = vld [vmem:[#allocation6 + $0x28] sm:$0xff]  }
  0x3b   :  { %v866_v14 = vld [vmem:[#allocation6 + $0x30] sm:$0xff]   ;;  %v867_v15 = vld [vmem:[#allocation6 + $0x38] sm:$0xff]   ;;  %v868_v16 = vld [vmem:[#allocation3] sm:$0xff]  }
  0x3c   :  { %785 = vmatpush3.bf16.msra.mxu0 %v853_v1  ;;  %830 = vmatprep.mubr.bf16.mxu1 %v868_v16  ;;  %v646_v18 = vld [vmem:[%s1074_s3] ss:$0 sm:$0xff]  ;;  %v869_v58 = vld [vmem:[#allocation3 + $0x8] sm:$0xff]   ;;  %v870_v59 = vld [vmem:[#allocation3 + $0x10] sm:$0xff]   ;;  %s975_s3 = smov [#allocation9]  }
  0x3d   :  { %786 = vmatprep.subr.bf16.mxu0 %v854_v2  ;;  %v871_v60 = vld [vmem:[#allocation3 + $0x18] sm:$0xff]   ;;  %v872_v61 = vld [vmem:[#allocation3 + $0x20] sm:$0xff]   ;;  %v873_v62 = vld [vmem:[#allocation3 + $0x28] sm:$0xff]   ;;  %s633_s26 = sshll.u32 %s975_s3, 4  ;;  %s634_s26 = int_to_ptr.vmem [resolvable:$true] %s633_s26 }
  0x3e   :  { %v874_v63 = vld [vmem:[#allocation3 + $0x30] sm:$0xff]   ;;  %v875_v0 = vld [vmem:[#allocation3 + $0x38] sm:$0xff]   ;;  %s942_s29 = scalar_lea.vmem %s634_s26, 1024  ;;  %p947_p11 = scmp.lt.s32.totalorder %s634_s26, %s634_s26 }
  0x3f   :  { %p943_p10 = scmp.ne.s32.totalorder %s634_s26, %s942_s29  ;;  %p948_p12 = scmp.lt.s32.totalorder %s942_s29, %s942_s29 }
  0x40   :  { %787 = vmatpush3.bf16.msra.mxu0 %v854_v2 }
  0x41   :  { %788 = vmatprep.subr.bf16.mxu0 %v855_v3  ;;  %p949_p13 = por %p948_p12, %p947_p11 }
  0x43   :  { %p950_p0 = pnand %p949_p13, %p943_p10 }
  0x44   :  { %789 = vmatpush3.bf16.msra.mxu0 %v855_v3 }
  0x45   :  { %790 = vmatprep.subr.bf16.mxu0 %v856_v5 }
  0x48   :  { %791 = vmatpush3.bf16.msra.mxu0 %v856_v5 }
  0x49   :  { %792 = vmatprep.subr.bf16.mxu0 %v857_v6 }
  0x4c   :  { %793 = vmatpush3.bf16.msra.mxu0 %v857_v6 }
  0x4d   :  { %794 = vmatprep.subr.bf16.mxu0 %v858_v7 }
  0x50   :  { %795 = vmatpush3.bf16.msra.mxu0 %v858_v7 }
  0x51   :  { %796 = vmatprep.subr.bf16.mxu0 %v859_v8 }
  0x54   :  { %797 = vmatpush3.bf16.msra.mxu0 %v859_v8 }
  0x57   :  { %799 = vmatmul.mubr.bf16.vlgmr.msra.gmra.mrb[0].mxu0 %v861_v9 }
  0x58   :  { %802 = vmatprep.mubr.bf16.mxu0 %v862_v10 }
  0x5f   :  { %803 = vmatmul.mubr.bf16.gmra.mrb[4].mxu0 %v863_v11 }
  0x60   :  { %806 = vmatprep.mubr.bf16.mxu0 %v864_v12 }
  0x67   :  { %807 = vmatmul.mubr.bf16.gmra.mrb[8].mxu0 %v865_v13 }
  0x68   :  { %810 = vmatprep.mubr.bf16.mxu0 %v866_v14 }
  0x6f   :  { %811 = vmatmul.mubr.bf16.gmra.mrb[12].mxu0 %v867_v15 }
 0x12a   :  { %v800_v17 = vpop.f32.mrb[0].mxu0 }
 0x12b   :  { %v249_v19 = vpop.f32.mrb[1].mxu0  ;;  %v258_v21 = vadd.f32 %v800_v17, %v646_v18 }
 0x12c   :  { %v801_v20 = vpop.f32.mrb[2].mxu0  ;;  %v250_v24 = vadd.f32 %v646_v18, %v249_v19 }
 0x12d   :  { %v261_v22 = vadd.f32 %v801_v20, %v646_v18  ;;  %v252_v23 = vpop.f32.mrb[3].mxu0 }
 0x12e   :  { %v253_v25 = vadd.f32 %v646_v18, %v252_v23 }
 0x12f   :  { %v345_v26 = vpack.c.bf16 %v261_v22, %v258_v21 }
 0x130   :  { %v344_v27 = vpack.c.bf16 %v253_v25, %v250_v24 }
 0x132   :  { %v804_v28 = vpop.f32.mrb[4].mxu0  ;;  %814 = vmatprep.subr.bf16.mxu1 %v344_v27 }
 0x133   :  { %v265_v29 = vpop.f32.mrb[5].mxu0  ;;  %815 = vmatpush3.bf16.msra.mxu1 %v344_v27  ;;  %v274_v31 = vadd.f32 %v804_v28, %v646_v18 }
 0x134   :  { %v805_v30 = vpop.f32.mrb[6].mxu0  ;;  %816 = vmatprep.subr.bf16.mxu1 %v345_v26  ;;  %v266_v34 = vadd.f32 %v646_v18, %v265_v29 }
 0x135   :  { %v277_v32 = vadd.f32 %v805_v30, %v646_v18  ;;  %v268_v33 = vpop.f32.mrb[7].mxu0 }
 0x136   :  { %v269_v35 = vadd.f32 %v646_v18, %v268_v33 }
 0x137   :  { %v347_v36 = vpack.c.bf16 %v277_v32, %v274_v31  ;;  %817 = vmatpush3.bf16.msra.mxu1 %v345_v26 }
 0x138   :  { %v346_v37 = vpack.c.bf16 %v269_v35, %v266_v34 }
 0x13a   :  { %v808_v38 = vpop.f32.mrb[8].mxu0  ;;  %818 = vmatprep.subr.bf16.mxu1 %v346_v37 }
 0x13b   :  { %v281_v39 = vpop.f32.mrb[9].mxu0  ;;  %819 = vmatpush3.bf16.msra.mxu1 %v346_v37  ;;  %v290_v41 = vadd.f32 %v808_v38, %v646_v18 }
 0x13c   :  { %v809_v40 = vpop.f32.mrb[10].mxu0  ;;  %820 = vmatprep.subr.bf16.mxu1 %v347_v36  ;;  %v282_v44 = vadd.f32 %v646_v18, %v281_v39 }
 0x13d   :  { %v293_v42 = vadd.f32 %v809_v40, %v646_v18  ;;  %v284_v43 = vpop.f32.mrb[11].mxu0 }
 0x13e   :  { %v285_v45 = vadd.f32 %v646_v18, %v284_v43 }
 0x13f   :  { %v349_v46 = vpack.c.bf16 %v293_v42, %v290_v41  ;;  %821 = vmatpush3.bf16.msra.mxu1 %v347_v36 }
 0x140   :  { %v348_v47 = vpack.c.bf16 %v285_v45, %v282_v44 }
 0x142   :  { %v812_v48 = vpop.f32.mrb[12].mxu0  ;;  %822 = vmatprep.subr.bf16.mxu1 %v348_v47 }
 0x143   :  { %v297_v49 = vpop.f32.mrb[13].mxu0  ;;  %823 = vmatpush3.bf16.msra.mxu1 %v348_v47  ;;  %v306_v51 = vadd.f32 %v812_v48, %v646_v18 }
 0x144   :  { %v813_v50 = vpop.f32.mrb[14].mxu0  ;;  %824 = vmatprep.subr.bf16.mxu1 %v349_v46  ;;  %v298_v54 = vadd.f32 %v646_v18, %v297_v49 }
 0x145   :  { %v309_v52 = vadd.f32 %v813_v50, %v646_v18  ;;  %v300_v53 = vpop.f32.mrb[15].mxu0 }
 0x146   :  { %v301_v55 = vadd.f32 %v646_v18, %v300_v53 }
 0x147   :  { %v351_v56 = vpack.c.bf16 %v309_v52, %v306_v51  ;;  %825 = vmatpush3.bf16.msra.mxu1 %v349_v46 }
 0x148   :  { %v350_v57 = vpack.c.bf16 %v301_v55, %v298_v54 }
 0x14a   :  { %826 = vmatprep.subr.bf16.mxu1 %v350_v57 }
 0x14b   :  { %827 = vmatpush3.bf16.msra.mxu1 %v350_v57 }
 0x14c   :  { %828 = vmatprep.subr.bf16.mxu1 %v351_v56 }
 0x14f   :  { %829 = vmatpush3.bf16.msra.mxu1 %v351_v56 }
 0x152   :  { %831 = vmatmul.mubr.bf16.vlgmr.msra.gmra.mrb[0].mxu1 %v869_v58 }
 0x153   :  { %834 = vmatprep.mubr.bf16.mxu1 %v870_v59 }
 0x15a   :  { %835 = vmatmul.mubr.bf16.gmra.mrb[4].mxu1 %v871_v60 }
 0x15b   :  { %838 = vmatprep.mubr.bf16.mxu1 %v872_v61 }
 0x162   :  { %839 = vmatmul.mubr.bf16.gmra.mrb[8].mxu1 %v873_v62 }
 0x163   :  { %842 = vmatprep.mubr.bf16.mxu1 %v874_v63 }
 0x16a   :  { %843 = vmatmul.mubr.bf16.gmra.mrb[12].mxu1 %v875_v0 }
 0x225   :  { %v832_v1 = vpop.f32.mrb[0].mxu1 }
 0x226   :  { %v434_v2 = vpop.f32.mrb[1].mxu1 }
 0x227   :  { %v833_v3 = vpop.f32.mrb[2].mxu1 }
 0x228   :  { %v711_v4 = vpack.c.bf16 %v833_v3, %v832_v1  ;;  %v437_v5 = vpop.f32.mrb[3].mxu1 }
 0x229   :  { %v706_v6 = vpack.c.bf16 %v437_v5, %v434_v2 }
 0x22a   :  { %743 = vst [vmem:[#allocation9 + $0x8] sm:$0xff] %v711_v4  }
 0x22b   :  { %707 = vst [vmem:[#allocation9] sm:$0xff] %v706_v6  }
 0x22d   :  { %v836_v7 = vpop.f32.mrb[4].mxu1 }
 0x22e   :  { %v450_v8 = vpop.f32.mrb[5].mxu1 }
 0x22f   :  { %v837_v9 = vpop.f32.mrb[6].mxu1 }
 0x230   :  { %v721_v10 = vpack.c.bf16 %v837_v9, %v836_v7  ;;  %v453_v11 = vpop.f32.mrb[7].mxu1 }
 0x231   :  { %v716_v12 = vpack.c.bf16 %v453_v11, %v450_v8 }
 0x232   :  { %745 = vst [vmem:[#allocation9 + $0x18] sm:$0xff] %v721_v10  }
 0x233   :  { %744 = vst [vmem:[#allocation9 + $0x10] sm:$0xff] %v716_v12  }
 0x235   :  { %v840_v13 = vpop.f32.mrb[8].mxu1 }
 0x236   :  { %v466_v14 = vpop.f32.mrb[9].mxu1 }
 0x237   :  { %v841_v15 = vpop.f32.mrb[10].mxu1 }
 0x238   :  { %v731_v16 = vpack.c.bf16 %v841_v15, %v840_v13  ;;  %v469_v17 = vpop.f32.mrb[11].mxu1 }
 0x239   :  { %v726_v18 = vpack.c.bf16 %v469_v17, %v466_v14 }
 0x23a   :  { %747 = vst [vmem:[#allocation9 + $0x28] sm:$0xff] %v731_v16  }
 0x23b   :  { %746 = vst [vmem:[#allocation9 + $0x20] sm:$0xff] %v726_v18  }
 0x23d   :  { %v844_v19 = vpop.f32.mrb[12].mxu1 }
 0x23e   :  { %v482_v20 = vpop.f32.mrb[13].mxu1 }
 0x23f   :  { %v845_v21 = vpop.f32.mrb[14].mxu1 }
 0x240   :  { %v741_v22 = vpack.c.bf16 %v845_v21, %v844_v19  ;;  %v485_v23 = vpop.f32.mrb[15].mxu1 }
 0x241   :  { %v736_v24 = vpack.c.bf16 %v485_v23, %v482_v20 }
 0x242   :  { %749 = vst [vmem:[#allocation9 + $0x38] sm:$0xff] %v741_v22  }
 0x243   :  { %748 = vst [vmem:[#allocation9 + $0x30] sm:$0xff] %v736_v24  }
 0x244   :  { %953 = shalt.err (!%p950_p0)
}
 0x245   :  { %s954_s6 = scalar_lea.hbm %s1075_s4, 1024 }
 0x246   :  { %p955_p1 = scmp.ne.s32.totalorder %s1075_s4, %s954_s6  ;;  %p958_p2 = scmp.lt.u32.totalorder %s954_s6, %s1075_s4 }
 0x248   :  { %p960_p3 = pnand %p958_p2, %p955_p1 }
 0x24a   :  { %963 = shalt.err (!%p960_p3)
}
 0x24b   :  { %639 = dma.vmem_to_hbm [thread:$0]  %s634_s26, 1024, %s1075_s4, [#allocation5], %s972_s27, %s972_s27, %s973_s28  }
 0x24c   :  { %968 = dma.done.wait [#allocation5], 1024  }
 0x24d   :  { %969 = vsyncadd [#allocation5], 4294966272 }
 0x24e   :  { %643 = vsyncpa [#allocation4], 1 }
 0x24f   :  { %644 = vsyncpa [#allocation7], 1 }
 0x250   :  { %645 = vsyncpa [#allocation5], 1 }

</bundles_post_ra>
